<compile_context>
chip_gen: v7x
topology: tpu7x:2x2x1
jax: 0.10.0
libtpu: 0.0.40
codegen_flags: <defaults>
</compile_context>

<pallas_src>
import jax
import jax.numpy as jnp
from jax.experimental import pallas as pl
from jax.experimental.pallas import tpu as pltpu


def _round_up(x, m):
    return (x + m - 1) // m * m


def _divisors(n):
    return [d for d in range(1, n + 1) if n % d == 0]


def shortcut1d_kernel(x_ref, w_ref, bias_ref, res_ref, o_ref):
    # x_ref:    (TB, ni, TL)   input tile of the 1x1 conv
    # w_ref:    (nf, ni)       conv weight with BN scale pre-folded
    # bias_ref: (nf, 1)        folded BN bias = beta - mean * gamma / sqrt(var + eps)
    # res_ref:  (TB, nf, TL)   residual ('out') tile
    # o_ref:    (TB, nf, TL)   result tile
    tb = x_ref.shape[0]
    nf, ni = w_ref.shape
    if tb == 1:
        y = jnp.dot(w_ref[...], x_ref[0], preferred_element_type=jnp.float32)[None]
    else:
        # Single batched contraction over the whole block (bounded live ranges,
        # one MXU stream) instead of an unrolled per-batch Python loop.
        w = jnp.broadcast_to(w_ref[...][None], (tb, nf, ni))
        y = jnp.einsum("bfc,bcl->bfl", w, x_ref[...],
                       preferred_element_type=jnp.float32)
    # Bias broadcast happens once per grid step (not once per batch row).
    y = y + bias_ref[...][None] + res_ref[...].astype(jnp.float32)
    o_ref[...] = jnp.maximum(y, 0.0).astype(o_ref.dtype)


def shortcut1d(inp, out, weight, gamma, beta, running_mean, running_var, eps=1e-5):
    """ReLU(out + BN(Conv1d_1x1(inp))) with BatchNorm in eval mode (running stats)."""
    # TODO(synk): training-mode BatchNorm (batch statistics + running-stat update)
    # is not implemented; this is the inference-mode forward pass.
    N, ni, L = inp.shape
    nf = weight.shape[0]
    assert out.shape == (N, nf, L)

    # Fold inference BatchNorm into the 1x1 conv.
    scale = gamma / jnp.sqrt(running_var + eps)                         # (nf,)
    bias = (beta - running_mean * scale).reshape(nf, 1).astype(jnp.float32)
    w2d = (weight.reshape(nf, ni) * scale[:, None]).astype(inp.dtype)   # (nf, ni)

    itemsize = jnp.dtype(inp.dtype).itemsize

    # Generation-aware VMEM budget (v5e/v6e: 128 MiB physical, v7x: 64 MiB).
    try:
        vmem_cap = int(pltpu.get_tpu_info().vmem_capacity_bytes)
    except Exception:
        vmem_cap = 64 << 20
    budget = max(16 << 20, vmem_cap * 3 // 8)   # ~24 MiB on v7x, ~48 MiB on v5e/v6e

    def step_bytes(tb, tl):
        # Double-buffered streamed tiles + resident weight/bias.
        return 2 * tb * (ni + 2 * nf) * tl * itemsize + nf * ni * itemsize + nf * 4

    # ---- lane-axis tile: avoid whole-array pad/slice HBM passes.
    if L % 128 == 0:
        # Pick the largest multiple-of-128 divisor of L that fits the budget.
        L_work, needs_pad = L, False
        lane_blocks = L // 128
        TL = 128
        for d in sorted(_divisors(lane_blocks), reverse=True):
            if step_bytes(1, d * 128) <= budget:
                TL = d * 128
                break
    elif step_bytes(1, L) <= budget:
        # Ragged L but small enough: one full-extent lane tile, no padding at
        # all (block dim == full array dim waives the 128 rule; tail stores
        # are masked, which beats two extra HBM passes for pad + slice).
        L_work, needs_pad = L, False
        TL = L
    else:
        # Rare: ragged AND too big for one tile -> pad only to the next 128.
        L_work, needs_pad = _round_up(L, 128), True
        lane_blocks = L_work // 128
        TL = 128
        for d in sorted(_divisors(lane_blocks), reverse=True):
            if step_bytes(1, d * 128) <= budget:
                TL = d * 128
                break

    # ---- batch tile: grow until each step moves a few MiB of HBM traffic.
    target_step = 4 << 20
    TB = 1
    for cand in _divisors(N):
        if step_bytes(cand, TL) > budget:
            break
        TB = cand
        if step_bytes(TB, TL) >= target_step:
            break

    # ---- megacore guard: keep >= 2 grid steps so v7x's two TensorCores both
    # get work (harmless on single-core v5e/v6e — the problem is tiny here).
    if (N // TB) * (L_work // TL) < 2:
        if TB > 1:
            TB = max(d for d in _divisors(N) if d < TB)
        elif TL % 128 == 0 and TL > 128:
            lane_blocks = TL // 128
            TL = 128 * max(d for d in _divisors(lane_blocks) if d < lane_blocks)

    if needs_pad:
        pad = ((0, 0), (0, 0), (0, L_work - L))
        inp_p = jnp.pad(inp, pad)
        res_p = jnp.pad(out, pad)
    else:
        inp_p, res_p = inp, out

    grid = (N // TB, L_work // TL)
    vmem_limit = int(min(vmem_cap * 3 // 4,
                         max(16 << 20, step_bytes(TB, TL) + (4 << 20))))

    cost = pl.CostEstimate(
        flops=2 * N * nf * ni * L_work,
        transcendentals=0,
        bytes_accessed=(N * (ni + 2 * nf) * L_work + nf * ni + nf) * itemsize,
    )

    result = pl.pallas_call(
        shortcut1d_kernel,
        out_shape=jax.ShapeDtypeStruct((N, nf, L_work), out.dtype),
        grid=grid,
        in_specs=[
            pl.BlockSpec((TB, ni, TL), lambda b, l: (b, 0, l)),
            pl.BlockSpec((nf, ni), lambda b, l: (0, 0)),
            pl.BlockSpec((nf, 1), lambda b, l: (0, 0)),
            pl.BlockSpec((TB, nf, TL), lambda b, l: (b, 0, l)),
        ],
        out_specs=pl.BlockSpec((TB, nf, TL), lambda b, l: (b, 0, l)),
        compiler_params=pltpu.CompilerParams(
            dimension_semantics=("parallel", "parallel"),
            vmem_limit_bytes=vmem_limit,
        ),
        cost_estimate=cost,
    )(inp_p, w2d, bias, res_p)

    if needs_pad:
        result = result[:, :, :L]
    return result


if __name__ == "__main__":
    # Small shapes consistent with Shortcut1d(ni, nf) on (N, C, L) signals.
    N, ni, nf, L = 2, 8, 16, 128

    key = jax.random.PRNGKey(0)
    k_inp, k_out, k_w, k_g, k_b, k_m, k_v = jax.random.split(key, 7)

    inp = jax.random.normal(k_inp, (N, ni, L), dtype=jnp.float32)
    out = jax.random.normal(k_out, (N, nf, L), dtype=jnp.float32)

    # Conv1d(ni, nf, kernel_size=1, bias=False) weight: (nf, ni, 1)
    weight = jax.random.normal(k_w, (nf, ni, 1), dtype=jnp.float32) * 0.1
    # BatchNorm1d(nf) parameters (inference-mode running stats)
    gamma = 1.0 + 0.1 * jax.random.normal(k_g, (nf,), dtype=jnp.float32)
    beta = 0.1 * jax.random.normal(k_b, (nf,), dtype=jnp.float32)
    running_mean = 0.1 * jax.random.normal(k_m, (nf,), dtype=jnp.float32)
    running_var = jnp.abs(1.0 + 0.1 * jax.random.normal(k_v, (nf,), dtype=jnp.float32))

    # Pure-JAX reference.
    eps = 1e-5
    conv_ref = jnp.einsum("fc,ncl->nfl", weight[:, :, 0], inp)
    bn = (conv_ref - running_mean[None, :, None]) / jnp.sqrt(running_var + eps)[None, :, None]
    bn = bn * gamma[None, :, None] + beta[None, :, None]
    ref = jax.block_until_ready(jnp.maximum(out + bn, 0.0))

    result = shortcut1d(inp, out, weight, gamma, beta, running_mean, running_var, eps=eps)
    result = jax.block_until_ready(result)

    assert result.shape == ref.shape
    assert jnp.allclose(result, ref, atol=1e-4, rtol=1e-4), "mismatch vs reference"

    print("KERNEL_OK")
</pallas_src>

<mosaic_0001>
module attributes {stable_mosaic.version = 11 : i64} {
  func.func @shortcut1d_kernel(%arg0: i32, %arg1: i32, %arg2: memref<1x8x128xf32, #tpu.memory_space<vmem>>, %arg3: memref<16x8xf32, #tpu.memory_space<vmem>>, %arg4: memref<16x1xf32, #tpu.memory_space<vmem>>, %arg5: memref<1x16x128xf32, #tpu.memory_space<vmem>>, %arg6: memref<1x16x128xf32, #tpu.memory_space<vmem>>) attributes {dimension_semantics = [#tpu.dimension_semantics<parallel>, #tpu.dimension_semantics<parallel>], iteration_bounds = array<i64: 2, 1>, scalar_prefetch = 0 : i64, scratch_operands = 0 : i64, tpu.core_type = #tpu.core_type<tc>, window_params = [{transform_indices = @transform_0, window_bounds = array<i64: 1, 8, 128>}, {pipeline_mode = #tpu.pipeline_mode<synchronous>, transform_indices = @transform_1, window_bounds = array<i64: 16, 8>}, {pipeline_mode = #tpu.pipeline_mode<synchronous>, transform_indices = @transform_2, window_bounds = array<i64: 16, 1>}, {transform_indices = @transform_3, window_bounds = array<i64: 1, 16, 128>}, {transform_indices = @transform_4, window_bounds = array<i64: 1, 16, 128>}]} {
    %c0 = arith.constant 0 : index
    %c0_0 = arith.constant 0 : index
    %0 = vector.load %arg3[%c0, %c0_0] : memref<16x8xf32, #tpu.memory_space<vmem>>, vector<16x8xf32>
    %c0_1 = arith.constant 0 : index
    %c0_2 = arith.constant 0 : index
    %c0_3 = arith.constant 0 : index
    %1 = vector.load %arg2[%c0_1, %c0_2, %c0_3] : memref<1x8x128xf32, #tpu.memory_space<vmem>>, vector<1x8x128xf32>
    %2 = vector.shape_cast %1 : vector<1x8x128xf32> to vector<8x128xf32>
    %cst = arith.constant dense<0.000000e+00> : vector<16x128xf32>
    %3 = tpu.matmul %0, %2, %cst {dimension_numbers = #tpu.dot_dimension_numbers<[1], [0], [0], [1], [0, 0, 1, 1], [], []>} : vector<16x8xf32>, vector<8x128xf32>, vector<16x128xf32> -> vector<16x128xf32>
    %4 = vector.shape_cast %3 : vector<16x128xf32> to vector<1x16x128xf32>
    %c0_4 = arith.constant 0 : index
    %c0_5 = arith.constant 0 : index
    %5 = vector.load %arg4[%c0_4, %c0_5] : memref<16x1xf32, #tpu.memory_space<vmem>>, vector<16x1xf32>
    %6 = vector.shape_cast %5 : vector<16x1xf32> to vector<1x16x1xf32>
    %7 = vector.broadcast %6 : vector<1x16x1xf32> to vector<1x16x128xf32>
    %8 = arith.addf %4, %7 : vector<1x16x128xf32>
    %c0_6 = arith.constant 0 : index
    %c0_7 = arith.constant 0 : index
    %c0_8 = arith.constant 0 : index
    %9 = vector.load %arg5[%c0_6, %c0_7, %c0_8] : memref<1x16x128xf32, #tpu.memory_space<vmem>>, vector<1x16x128xf32>
    %10 = arith.addf %8, %9 : vector<1x16x128xf32>
    %cst_9 = arith.constant 0.000000e+00 : f32
    %11 = vector.broadcast %cst_9 : f32 to vector<1x16x128xf32>
    %12 = arith.maximumf %10, %11 : vector<1x16x128xf32>
    %c0_10 = arith.constant 0 : index
    %c0_11 = arith.constant 0 : index
    %c0_12 = arith.constant 0 : index
    %13 = vector.load %arg6[%c0_10, %c0_11, %c0_12] : memref<1x16x128xf32, #tpu.memory_space<vmem>>, vector<1x16x128xf32>
    tpu.vector_store %arg6[%c0_10, %c0_11, %c0_12], %12 {strides = array<i32>} : memref<1x16x128xf32, #tpu.memory_space<vmem>>, vector<1x16x128xf32>,
    return
  }
  func.func @transform_0(%arg0: i32, %arg1: i32) -> (i32, i32, i32) {
    %c0_i32 = arith.constant 0 : i32
    %c0_i32_0 = arith.constant 0 : i32
    return %arg0, %c0_i32, %arg1 : i32, i32, i32
  }
  func.func @transform_1(%arg0: i32, %arg1: i32) -> (i32, i32) {
    %c0_i32 = arith.constant 0 : i32
    %c0_i32_0 = arith.constant 0 : i32
    %c0_i32_1 = arith.constant 0 : i32
    return %c0_i32, %c0_i32_0 : i32, i32
  }
  func.func @transform_2(%arg0: i32, %arg1: i32) -> (i32, i32) {
    %c0_i32 = arith.constant 0 : i32
    %c0_i32_0 = arith.constant 0 : i32
    %c0_i32_1 = arith.constant 0 : i32
    return %c0_i32, %c0_i32_0 : i32, i32
  }
  func.func @transform_3(%arg0: i32, %arg1: i32) -> (i32, i32, i32) {
    %c0_i32 = arith.constant 0 : i32
    %c0_i32_0 = arith.constant 0 : i32
    return %arg0, %c0_i32, %arg1 : i32, i32, i32
  }
  func.func @transform_4(%arg0: i32, %arg1: i32) -> (i32, i32, i32) {
    %c0_i32 = arith.constant 0 : i32
    %c0_i32_0 = arith.constant 0 : i32
    return %arg0, %c0_i32, %arg1 : i32, i32, i32
  }
}

</mosaic_0001>

<bundles_post_ra>
// kernel: tpu_custom_call.1
= control target key start
LH: loop header
LB: loop body
LE: loop exit
PB: predicated region body
PF: predicated region fallthrough
CT: control target
= control target key end

     0   :  { %9 = vsyncpa [#allocation3], 0  ;;  %s788_s0 = inlined_call_operand.vmem [shape: f32[2,8,128], index: 0, kind: input, shape index: {}]   ;;  %s789_s1 = inlined_call_operand.vmem [shape: f32[16,8], index: 1, kind: input, shape index: {}]   ;;  %s790_s2 = inlined_call_operand.vmem [shape: f32[16,1], index: 2, kind: input, shape index: {}]   ;;  %s791_s3 = inlined_call_operand.vmem [shape: f32[2,16,128], index: 3, kind: input, shape index: {}]   ;;  %s792_s4 = inlined_call_operand.hbm [shape: f32[2,16,128], index: 4, kind: output, shape index: {}]  }
   0x1   :  { %11 = vsyncpa [#allocation3 + $0x1], 0  ;;  %s658_s15 = smov 0   ;;  %s660_s16 = smov 0  }
   0x2   :  { %s662_s17 = smov 0   ;;  %s664_s18 = smov 0  }
   0x3   :  { %s666_s19 = smov 0   ;;  %s668_s20 = smov 0  }
   0x4 LB: > { %s464_s21 = sadd.s32 4294967295, %s627_s20   ;;  %s465_s22 = sadd.s32 4294967294, %s627_s20   ;;  %s627_s20 = sphi %s668_s20, %s17_s20   ;;  %s623_s19 = sphi %s666_s19, %s799_s19   ;;  %s619_s18 = sphi %s664_s18, %s798_s18   ;;  %s615_s17 = sphi %s662_s17, %s797_s17   ;;  %s611_s16 = sphi %s660_s16, %s796_s16   ;;  %s607_s15 = sphi %s658_s15, %s795_s15  }
   0x5   : > { %s29_s23 = sadd.s32 1, %s623_s19  ;;  %s136_s24 = sadd.s32 1, %s615_s17 }
   0x6   : > { %p31_p0 = scmp.ge.s32.totalorder %s29_s23, 2  ;;  %p146_p1 = scmp.ne.s32.totalorder %s615_s17, %s611_s16 }
   0x7   : > { %p147_p2 = scmp.eq.s32.totalorder %s464_s21, 1  ;;  %p152_p3 = scmp.ne.s32.totalorder %s611_s16, %s607_s15 }
   0x8   : > { %s801_s23 = smov (%p31_p0, %s29_s23), 0  ;;  %p153_p5 = scmp.eq.s32.totalorder %s465_s22, 1 }
   0x9   : > { %p698_p4 = por %p147_p2, %p146_p1  ;;  %s131_s26 = ssub.s32 %s623_s19, %s801_s23 }
   0xa   : > { %p468_p6 = scmp.ge.s32.totalorder %s627_s20, 1  ;;  %p134_p7 = scmp.eq.s32.totalorder %s131_s26, 0 }
   0xb   : > { %p705_p8 = por %p153_p5, %p152_p3  ;;  %p198_p9 = scmp.lt.s32.totalorder %s627_s20, 3 }
   0xc   : > { %s711_s28 = scalar_select %p134_p7, %s615_s17, %s136_s24  }
   0xd   : > { %p199_p10 = pnand %p468_p6, %p198_p9 }
   0xe   : > { %p234_p11 = scmp.lt.s32.totalorder (!%p199_p10), %s619_s18, 1  ;;  %v249_v0 = vld [vmem:[%s789_s1] sm:$0xff] (!%p199_p10)  ;;  %vm252_vm0 = vcmask (!%p199_p10), 64512   ;;  %v629_v2 = vmov (!%p199_p10), 0   ;;  %v335_v3 = vld [vmem:[%s790_s2 + $0x8] sm:$0xff] (!%p199_p10)  ;;  %s231_s22 = sand.u32 (!%p199_p10), 1, %s611_s16  }
   0xf   : > { %202 = sbr.rel (%p199_p10) target bundleno = 263 (0x107), region = 36  ;;  %v334_v1 = vld [vmem:[%s790_s2] sm:$0xff] (!%p199_p10)  ;;  %487 = vmatprep.mubr.msk.f32.mxu0 (!%p199_p10), %vm252_vm0, %v249_v0  ;;  %548 = vset.pattern.permute.xlu0 (!%p199_p10), %v629_v2  ;;  %v250_v5 = vld [vmem:[%s789_s1 + $0x8] sm:$0xff] (!%p199_p10)  ;;  %s469_s26 = sshll.u32 (!%p199_p10), %s231_s22, 4 }
  0x10   : > { %338 = vperm.xlu0 (!%p199_p10), %548, %v334_v1   ;;  %s233_s6 = scalar_lea.vmem (!%p199_p10), [#allocation2], %s469_s26  ;;  %s481_s9 = sshll.u32 (!%p199_p10), %s619_s18, 8 }
  0x11   : > { %s371_s8 = sshll.u32 (!%p199_p10), %s233_s6, 4  ;;  %s740_s11 = scalar_lea.hbm (!%p199_p10), %s792_s4, %s481_s9  ;;  %s735_s8 = int_to_ptr.vmem [resolvable:$true] %s371_s8 }
  0x12   : > { %s742_s12 = scalar_lea.sflag (!%p199_p10), [#allocation3], %s231_s22 }
  0x14   : > { %343 = vperm.xlu0 (!%p199_p10), %548, %v335_v3  }
  0x16   : > { %s235_s7 = scalar_select %p234_p11, %s619_s18, 1 }
  0x17   : > { %s630_s18 = smov [#allocation2]  }
  0x18   : > { %s470_s10 = sshll.u32 %s235_s7, 3  ;;  %s480_s24 = sshll.u32 %s235_s7, 4 }
  0x19   : > { %s240_s13 = scalar_lea.vmem %s788_s0, %s470_s10  ;;  %s248_s5 = scalar_lea.vmem %s791_s3, %s480_s24 }
  0x1a   : > { %v251_v4 = vld [vmem:[%s240_s13] sm:$0xff]  ;;  %v349_v9 = vld [vmem:[%s248_s5 + $0x8] sm:$0xff]  ;;  %s549_s13 = scalar_lea.vmem %s735_s8, 256  ;;  %s553_s14 = sshll.u32 %s630_s18, 4  ;;  %s554_s14 = int_to_ptr.vmem [resolvable:$false] %s553_s14 }
  0x1b   : > { %485 = vmatprep.subr.mxu0 %v251_v4  ;;  %v348_v12 = vld [vmem:[%s248_s5] sm:$0xff]  ;;  %p550_p12 = scmp.ne.s32.totalorder %s735_s8, %s549_s13  ;;  %s555_s21 = scalar_lea.vmem %s554_s14, 512 }
  0x1c   : > { %486 = vmatpush3.msra.mxu0 %v251_v4  ;;  %p556_p1 = scmp.lt.s32.totalorder %s735_s8, %s554_s14  ;;  %p557_p2 = scmp.lt.s32.totalorder %s555_s21, %s549_s13 }
  0x1d   : > { %488 = vmatmul.mubr.msk.f32.vlgmr.msra.gmra.mrb[0].mxu0 %vm252_vm0, %v250_v5  ;;  %p551_p13 = pnand %p550_p12, %p698_p4 }
  0x1e   : > { %p558_p3 = por %p557_p2, %p556_p1 }
  0x1f   : > { %p552_p0 = pneg %p551_p13 }
  0x21   : > { %p559_p5 = pnand %p558_p3, %p552_p0 }
  0x8f   : > { %v339_v6 = vpop.permute.xlu0 %338 }
  0x93   : > { %v344_v7 = vpop.permute.xlu0 %343 }
  0xf0   : > { %v489_v8 = vpop.f32.mrb[0].mxu0 }
  0xf1   : > { %v347_v10 = vadd.f32 %v489_v8, %v344_v7  ;;  %v325_v11 = vpop.f32.mrb[1].mxu0 }
  0xf2   : > { %v346_v13 = vadd.f32 %v339_v6, %v325_v11 }
  0xf3   : > { %v351_v14 = vadd.f32 %v349_v9, %v347_v10 }
  0xf4   : > { %v350_v15 = vadd.f32 %v348_v12, %v346_v13 }
  0xf5   : > { %v353_v16 = vmax.f32 %v351_v14, 0.0 }
  0xf6   : > { %v352_v17 = vmax.f32 %v350_v15, 0.0 }
  0xf7   : > { %355 = vst [vmem:[%s233_s6 + $0x8] sm:$0xff] %v353_v16 }
  0xf8   : > { %354 = vst [vmem:[%s233_s6] sm:$0xff] %v352_v17 }
  0xf9   : > { %562 = shalt.err (!%p559_p5)
}
  0xfa   : > { %s563_s22 = scalar_lea.hbm %s740_s11, 256  ;;  %s567_s29 = scalar_lea.hbm %s792_s4, 512 }
  0xfb   : > { %p564_p6 = scmp.ne.s32.totalorder %s740_s11, %s563_s22  ;;  %p568_p10 = scmp.lt.u32.totalorder %s740_s11, %s792_s4 }
  0xfc   : > { %p569_p11 = scmp.lt.u32.totalorder %s567_s29, %s563_s22  ;;  %p571_p13 = scmp.lt.u32.totalorder %s563_s22, %s740_s11 }
  0xfd   : > { %p565_p7 = pnand %p564_p6, %p698_p4 }
  0xfe   : > { %p570_p12 = por %p569_p11, %p568_p10 }
  0xff   : > { %p566_p9 = pneg %p565_p7 }
 0x100   : > { %p572_p0 = por %p571_p13, %p570_p12 }
 0x102   : > { %p573_p1 = pnand %p572_p0, %p566_p9 }
 0x104   : > { %576 = shalt.err (!%p573_p1)
}
 0x105   : > { %s631_s6 = smov 128   ;;  %s632_s9 = smov 8  }
 0x106   : > { %490 = dma.vmem_to_hbm [thread:$0]  (%p698_p4), %s735_s8, 256, %s740_s11, %s742_s12, %s631_s6, %s631_s6, %s632_s9  }
 0x107 PF: > { %p496_p2 = scmp.ge.s32.totalorder %s627_s20, 2  ;;  %s386_s7 = sand.u32 1, %s607_s15  }
 0x108   : > { %s387_s10 = scalar_lea.sflag [#allocation3], %s386_s7 }
 0x109   : > { %p493_p3 = pnand %p496_p2, %p705_p8 }
 0x10b   : > { %602 = dma.done.wait (!%p493_p3), %s387_s10, 256  }
 0x10c   : > { %604 = vsyncadd (!%p493_p3), %s387_s10, 4294967040  ;;  %s17_s20 = sadd.s32 1, %s627_s20   ;;  %s795_s15 = smov %s611_s16 }
 0x10d   : > { %p14_p5 = scmp.ge.s32.totalorder %s17_s20, 4   ;;  %s796_s16 = smov %s615_s17 }
 0x10e   : > { %s797_s17 = smov %s711_s28  ;;  %s798_s18 = smov %s623_s19 }
 0x10f   : > { %s799_s19 = smov %s801_s23  ;;  %16 = sbr.rel (!%p14_p5) target bundleno = 4 (0x4), region = 74 }
 0x116   :  { %392 = vsyncpa [#allocation3], 1 }
 0x117   :  { %394 = vsyncpa [#allocation3 + $0x1], 1 }

</bundles_post_ra>
